<compile_context>
chip_gen: v7x
topology: tpu7x:2x2x1
jax: 0.10.0
libtpu: 0.0.40
codegen_flags: <defaults>
</compile_context>

<pallas_src>
import functools

import numpy as np
import jax
import jax.numpy as jnp
from jax.experimental import pallas as pl
from jax.experimental.pallas import tpu as pltpu

# ---------------- model configuration (small, deterministic) ----------------
VARIABLE_SIZES = (3, 5, 8, 8)           # decoder output groups
INPUT_SIZE = sum(VARIABLE_SIZES)        # 24 (one-hot concat input)
CODE_SIZE = 32
ENCODER_HIDDEN_SIZES = (16,)
DECODER_HIDDEN_SIZES = (16,)
BATCH = 4

OUT_PAD = 128                           # fused lane-dense output slab width
_VMEM = pltpu.MemorySpace.VMEM


def _round_up(x, m):
    return ((x + m - 1) // m) * m


# ------------------------------- Pallas kernel ------------------------------
def _autoencoder_kernel(
    x_ref,
    we1_ref, be1_ref,            # encoder hidden Linear
    we2_ref, be2_ref,            # encoder output Linear (-> code)
    wd_ref, bd_ref,              # decoder hidden Linear
    wo_ref, bo_ref,              # concatenated MultiCategorical output Linears
    gmat_ref, gmat_t_ref,        # static one-hot group membership (24,4)/(4,24)
    out_ref,                     # fused (TB, OUT_PAD): [code | recon | pad]
    *, normalize_code, code_size, logits_size, out_pad,
):
    x = x_ref[...]

    # ---- Encoder: Linear -> tanh -> Linear -> tanh ----
    h = jnp.tanh(
        jnp.dot(x, we1_ref[...], preferred_element_type=jnp.float32) + be1_ref[...]
    )
    code = jnp.tanh(
        jnp.dot(h, we2_ref[...], preferred_element_type=jnp.float32) + be2_ref[...]
    )

    if normalize_code:
        # Matches the PyTorch module (no epsilon); an all-zero code row would
        # produce NaN in the reference too.
        sumsq = jnp.sum(code * code, axis=1, keepdims=True)
        code = code * jax.lax.rsqrt(sumsq)

    # ---- Decoder hidden: Linear -> tanh ----
    hd = jnp.tanh(
        jnp.dot(code, wd_ref[...], preferred_element_type=jnp.float32) + bd_ref[...]
    )

    # ---- MultiCategorical output: segmented softmax, full-width, one pass ----
    logits = (
        jnp.dot(hd, wo_ref[...], preferred_element_type=jnp.float32) + bo_ref[...]
    )
    # Shared per-row max shift: exact for per-group softmax since it upper-bounds
    # every group max. One XLU reduce instead of 4 narrow ones.
    row_max = jnp.max(logits, axis=1, keepdims=True)
    e = jnp.exp(logits - row_max)
    # Per-group exp sums and broadcast back through the (idle) MXU.
    gsum = jnp.dot(e, gmat_ref[...], preferred_element_type=jnp.float32)   # (TB, n_groups)
    inv = pl.reciprocal(gsum, approx=True)          # EUP, not VALU divide
    inv = inv * (2.0 - gsum * inv)                  # Newton step
    inv = inv * (2.0 - gsum * inv)                  # -> full f32 accuracy
    denom_inv = jnp.dot(inv, gmat_t_ref[...], preferred_element_type=jnp.float32)
    probs = e * denom_inv

    # ---- Single lane-dense store: [code | probs | zero pad] ----
    tb = x.shape[0]
    pad = out_pad - code_size - logits_size
    pieces = [code, probs]
    if pad > 0:
        pieces.append(jnp.zeros((tb, pad), jnp.float32))
    out_ref[...] = jnp.concatenate(pieces, axis=1)


# --------------------------------- wrapper ----------------------------------
def _group_matrices(variable_sizes):
    total = sum(variable_sizes)
    m = np.zeros((total, len(variable_sizes)), np.float32)
    start = 0
    for g, v in enumerate(variable_sizes):
        m[start:start + v, g] = 1.0
        start += v
    return jnp.asarray(m), jnp.asarray(np.ascontiguousarray(m.T))


def autoencoder_forward(x, params, *, normalize_code=False):
    """Returns (code, reconstructed), matching AutoEncoder.forward (softmax path)."""
    (we1, be1), (we2, be2), (wd, bd), (wo, bo) = params
    B = x.shape[0]

    # Batch tiling: pad rows to a multiple of the row tile so sublanes/MXU passes
    # are full and stores are unmasked; slice the padding away afterwards.
    tb = min(512, max(128, _round_up(B, 128)))
    b_pad = _round_up(B, tb)
    nsteps = b_pad // tb
    if b_pad != B:
        x = jnp.pad(x, ((0, b_pad - B), (0, 0)))

    gmat, gmat_t = _group_matrices(VARIABLE_SIZES)

    kernel = functools.partial(
        _autoencoder_kernel,
        normalize_code=normalize_code,
        code_size=CODE_SIZE,
        logits_size=INPUT_SIZE,
        out_pad=OUT_PAD,
    )

    def row_spec(shape):
        return pl.BlockSpec((tb, shape[1]), lambda i: (i, 0), memory_space=_VMEM)

    def const_spec(shape):
        # Constant block index -> stays VMEM-resident across grid steps.
        return pl.BlockSpec(shape, lambda i: (0,) * len(shape), memory_space=_VMEM)

    weights = (we1, be1, we2, be2, wd, bd, wo, bo, gmat, gmat_t)
    in_specs = [row_spec(x.shape)] + [const_spec(w.shape) for w in weights]
    out_spec = pl.BlockSpec((tb, OUT_PAD), lambda i: (i, 0), memory_space=_VMEM)

    # Advisory cost estimate so XLA schedules this custom call sensibly.
    h1 = ENCODER_HIDDEN_SIZES[0]
    h2 = DECODER_HIDDEN_SIZES[0]
    ng = len(VARIABLE_SIZES)
    flops_row = 2 * (INPUT_SIZE * h1 + h1 * CODE_SIZE + CODE_SIZE * h2
                     + h2 * INPUT_SIZE + INPUT_SIZE * ng + ng * INPUT_SIZE)
    transc_row = h1 + CODE_SIZE + h2 + INPUT_SIZE + ng
    bytes_weights = int(sum(np.prod(w.shape) for w in weights)) * 4
    cost = pl.CostEstimate(
        flops=int(flops_row * b_pad),
        transcendentals=int(transc_row * b_pad),
        bytes_accessed=int(4 * b_pad * (INPUT_SIZE + OUT_PAD) + bytes_weights),
    )

    fused = pl.pallas_call(
        kernel,
        out_shape=jax.ShapeDtypeStruct((b_pad, OUT_PAD), jnp.float32),
        grid=(nsteps,),
        in_specs=in_specs,
        out_specs=out_spec,
        compiler_params=pltpu.CompilerParams(dimension_semantics=("parallel",)),
        cost_estimate=cost,
    )(x, *weights)

    code = fused[:B, :CODE_SIZE]
    recon = fused[:B, CODE_SIZE:CODE_SIZE + INPUT_SIZE]
    return code, recon


# ------------------------ deterministic parameter init ----------------------
def _init_linear(key, in_features, out_features):
    """PyTorch nn.Linear default init; returns W as (in, out) and b as (1, out)."""
    kw, kb = jax.random.split(key)
    bound = 1.0 / jnp.sqrt(jnp.float32(in_features))
    w = jax.random.uniform(
        kw, (out_features, in_features), jnp.float32, -bound, bound
    ).T  # -> (in, out) for x @ W
    b = jax.random.uniform(kb, (1, out_features), jnp.float32, -bound, bound)
    return w, b


def init_params(key):
    keys = jax.random.split(key, 4 + len(VARIABLE_SIZES))
    we1, be1 = _init_linear(keys[0], INPUT_SIZE, ENCODER_HIDDEN_SIZES[0])
    we2, be2 = _init_linear(keys[1], ENCODER_HIDDEN_SIZES[0], CODE_SIZE)
    wd, bd = _init_linear(keys[2], CODE_SIZE, DECODER_HIDDEN_SIZES[0])
    ws, bs = [], []
    for i, v in enumerate(VARIABLE_SIZES):
        wi, bi = _init_linear(keys[3 + i], DECODER_HIDDEN_SIZES[0], v)
        ws.append(wi)
        bs.append(bi)
    wo = jnp.concatenate(ws, axis=1)          # (dec_hidden, sum(variable_sizes))
    bo = jnp.concatenate(bs, axis=1)          # (1, sum(variable_sizes))
    return (we1, be1), (we2, be2), (wd, bd), (wo, bo)


# ------------------------- pure-JAX reference (check) ------------------------
def _reference(x, params, normalize_code=False):
    (we1, be1), (we2, be2), (wd, bd), (wo, bo) = params
    h = jnp.tanh(x @ we1 + be1)
    code = jnp.tanh(h @ we2 + be2)
    if normalize_code:
        code = code / jnp.linalg.norm(code, axis=1, keepdims=True)
    hd = jnp.tanh(code @ wd + bd)
    logits = hd @ wo + bo
    outs, start = [], 0
    for v in VARIABLE_SIZES:
        outs.append(jax.nn.softmax(logits[:, start:start + v], axis=1))
        start += v
    return code, jnp.concatenate(outs, axis=1)


def _check(a, b, name):
    assert a.shape == b.shape, f"{name} shape mismatch: {a.shape} vs {b.shape}"
    assert jnp.allclose(a, b, atol=3e-5, rtol=3e-5), f"{name} mismatch"


# ----------------------------------- main ------------------------------------
if __name__ == "__main__":
    key = jax.random.PRNGKey(0)
    kx, kp, kb = jax.random.split(key, 3)

    params = init_params(kp)

    # Small batch (module-default sizes), both normalize_code settings.
    x = jax.random.uniform(kx, (BATCH, INPUT_SIZE), jnp.float32)
    for norm in (False, True):
        code, recon = autoencoder_forward(x, params, normalize_code=norm)
        code, recon = jax.block_until_ready((code, recon))
        code_ref, recon_ref = _reference(x, params, normalize_code=norm)
        _check(code, code_ref, f"code(norm={norm})")
        _check(recon, recon_ref, f"recon(norm={norm})")

    # Larger batch exercises the multi-step parallel grid + row padding path.
    xb = jax.random.uniform(kb, (1000, INPUT_SIZE), jnp.float32)
    code_b, recon_b = autoencoder_forward(xb, params, normalize_code=False)
    code_b, recon_b = jax.block_until_ready((code_b, recon_b))
    code_b_ref, recon_b_ref = _reference(xb, params, normalize_code=False)
    _check(code_b, code_b_ref, "code(batch=1000)")
    _check(recon_b, recon_b_ref, "recon(batch=1000)")

    print("KERNEL_OK")
</pallas_src>

<mosaic_0001>
module attributes {stable_mosaic.version = 11 : i64} {
  func.func @_autoencoder_kernel(%arg0: i32, %arg1: memref<128x24xf32, #tpu.memory_space<vmem>>, %arg2: memref<24x16xf32, #tpu.memory_space<vmem>>, %arg3: memref<1x16xf32, #tpu.memory_space<vmem>>, %arg4: memref<16x32xf32, #tpu.memory_space<vmem>>, %arg5: memref<1x32xf32, #tpu.memory_space<vmem>>, %arg6: memref<32x16xf32, #tpu.memory_space<vmem>>, %arg7: memref<1x16xf32, #tpu.memory_space<vmem>>, %arg8: memref<16x24xf32, #tpu.memory_space<vmem>>, %arg9: memref<1x24xf32, #tpu.memory_space<vmem>>, %arg10: memref<24x4xf32, #tpu.memory_space<vmem>>, %arg11: memref<4x24xf32, #tpu.memory_space<vmem>>, %arg12: memref<128x128xf32, #tpu.memory_space<vmem>>) attributes {dimension_semantics = [#tpu.dimension_semantics<parallel>], iteration_bounds = array<i64: 1>, scalar_prefetch = 0 : i64, scratch_operands = 0 : i64, tpu.core_type = #tpu.core_type<tc>, window_params = [{transform_indices = @transform_0, window_bounds = array<i64: 128, 24>}, {pipeline_mode = #tpu.pipeline_mode<synchronous>, transform_indices = @transform_1, window_bounds = array<i64: 24, 16>}, {pipeline_mode = #tpu.pipeline_mode<synchronous>, transform_indices = @transform_2, window_bounds = array<i64: 1, 16>}, {pipeline_mode = #tpu.pipeline_mode<synchronous>, transform_indices = @transform_3, window_bounds = array<i64: 16, 32>}, {pipeline_mode = #tpu.pipeline_mode<synchronous>, transform_indices = @transform_4, window_bounds = array<i64: 1, 32>}, {pipeline_mode = #tpu.pipeline_mode<synchronous>, transform_indices = @transform_5, window_bounds = array<i64: 32, 16>}, {pipeline_mode = #tpu.pipeline_mode<synchronous>, transform_indices = @transform_6, window_bounds = array<i64: 1, 16>}, {pipeline_mode = #tpu.pipeline_mode<synchronous>, transform_indices = @transform_7, window_bounds = array<i64: 16, 24>}, {pipeline_mode = #tpu.pipeline_mode<synchronous>, transform_indices = @transform_8, window_bounds = array<i64: 1, 24>}, {pipeline_mode = #tpu.pipeline_mode<synchronous>, transform_indices = @transform_9, window_bounds = array<i64: 24, 4>}, {pipeline_mode = #tpu.pipeline_mode<synchronous>, transform_indices = @transform_10, window_bounds = array<i64: 4, 24>}, {transform_indices = @transform_11, window_bounds = array<i64: 128, 128>}]} {
    %c0 = arith.constant 0 : index
    %c0_0 = arith.constant 0 : index
    %0 = vector.load %arg1[%c0, %c0_0] : memref<128x24xf32, #tpu.memory_space<vmem>>, vector<128x24xf32>
    %c0_1 = arith.constant 0 : index
    %c0_2 = arith.constant 0 : index
    %1 = vector.load %arg2[%c0_1, %c0_2] : memref<24x16xf32, #tpu.memory_space<vmem>>, vector<24x16xf32>
    %cst = arith.constant dense<0.000000e+00> : vector<128x16xf32>
    %2 = tpu.matmul %0, %1, %cst {dimension_numbers = #tpu.dot_dimension_numbers<[1], [0], [0], [1], [0, 0, 1, 1], [], []>} : vector<128x24xf32>, vector<24x16xf32>, vector<128x16xf32> -> vector<128x16xf32>
    %c0_3 = arith.constant 0 : index
    %c0_4 = arith.constant 0 : index
    %3 = vector.load %arg3[%c0_3, %c0_4] : memref<1x16xf32, #tpu.memory_space<vmem>>, vector<1x16xf32>
    %4 = vector.broadcast %3 : vector<1x16xf32> to vector<128x16xf32>
    %5 = arith.addf %2, %4 : vector<128x16xf32>
    %6 = math.tanh %5 : vector<128x16xf32>
    %c0_5 = arith.constant 0 : index
    %c0_6 = arith.constant 0 : index
    %7 = vector.load %arg4[%c0_5, %c0_6] : memref<16x32xf32, #tpu.memory_space<vmem>>, vector<16x32xf32>
    %cst_7 = arith.constant dense<0.000000e+00> : vector<128x32xf32>
    %8 = tpu.matmul %6, %7, %cst_7 {dimension_numbers = #tpu.dot_dimension_numbers<[1], [0], [0], [1], [0, 0, 1, 1], [], []>} : vector<128x16xf32>, vector<16x32xf32>, vector<128x32xf32> -> vector<128x32xf32>
    %c0_8 = arith.constant 0 : index
    %c0_9 = arith.constant 0 : index
    %9 = vector.load %arg5[%c0_8, %c0_9] : memref<1x32xf32, #tpu.memory_space<vmem>>, vector<1x32xf32>
    %10 = vector.broadcast %9 : vector<1x32xf32> to vector<128x32xf32>
    %11 = arith.addf %8, %10 : vector<128x32xf32>
    %12 = math.tanh %11 : vector<128x32xf32>
    %c0_10 = arith.constant 0 : index
    %c0_11 = arith.constant 0 : index
    %13 = vector.load %arg6[%c0_10, %c0_11] : memref<32x16xf32, #tpu.memory_space<vmem>>, vector<32x16xf32>
    %cst_12 = arith.constant dense<0.000000e+00> : vector<128x16xf32>
    %14 = tpu.matmul %12, %13, %cst_12 {dimension_numbers = #tpu.dot_dimension_numbers<[1], [0], [0], [1], [0, 0, 1, 1], [], []>} : vector<128x32xf32>, vector<32x16xf32>, vector<128x16xf32> -> vector<128x16xf32>
    %c0_13 = arith.constant 0 : index
    %c0_14 = arith.constant 0 : index
    %15 = vector.load %arg7[%c0_13, %c0_14] : memref<1x16xf32, #tpu.memory_space<vmem>>, vector<1x16xf32>
    %16 = vector.broadcast %15 : vector<1x16xf32> to vector<128x16xf32>
    %17 = arith.addf %14, %16 : vector<128x16xf32>
    %18 = math.tanh %17 : vector<128x16xf32>
    %c0_15 = arith.constant 0 : index
    %c0_16 = arith.constant 0 : index
    %19 = vector.load %arg8[%c0_15, %c0_16] : memref<16x24xf32, #tpu.memory_space<vmem>>, vector<16x24xf32>
    %cst_17 = arith.constant dense<0.000000e+00> : vector<128x24xf32>
    %20 = tpu.matmul %18, %19, %cst_17 {dimension_numbers = #tpu.dot_dimension_numbers<[1], [0], [0], [1], [0, 0, 1, 1], [], []>} : vector<128x16xf32>, vector<16x24xf32>, vector<128x24xf32> -> vector<128x24xf32>
    %c0_18 = arith.constant 0 : index
    %c0_19 = arith.constant 0 : index
    %21 = vector.load %arg9[%c0_18, %c0_19] : memref<1x24xf32, #tpu.memory_space<vmem>>, vector<1x24xf32>
    %22 = vector.broadcast %21 : vector<1x24xf32> to vector<128x24xf32>
    %23 = arith.addf %20, %22 : vector<128x24xf32>
    %cst_20 = arith.constant dense<0xFF800000> : vector<128xf32>
    %24 = vector.multi_reduction <maximumf>, %23, %cst_20 [1] : vector<128x24xf32> to vector<128xf32>
    %25 = vector.shape_cast %24 : vector<128xf32> to vector<128x1xf32>
    %26 = vector.broadcast %25 : vector<128x1xf32> to vector<128x24xf32>
    %27 = arith.subf %23, %26 : vector<128x24xf32>
    %28 = math.exp %27 : vector<128x24xf32>
    %c0_21 = arith.constant 0 : index
    %c0_22 = arith.constant 0 : index
    %29 = vector.load %arg10[%c0_21, %c0_22] : memref<24x4xf32, #tpu.memory_space<vmem>>, vector<24x4xf32>
    %cst_23 = arith.constant dense<0.000000e+00> : vector<128x4xf32>
    %30 = tpu.matmul %28, %29, %cst_23 {dimension_numbers = #tpu.dot_dimension_numbers<[1], [0], [0], [1], [0, 0, 1, 1], [], []>} : vector<128x24xf32>, vector<24x4xf32>, vector<128x4xf32> -> vector<128x4xf32>
    %31 = tpu.reciprocal %30 {approx = true} : vector<128x4xf32> -> vector<128x4xf32>
    %32 = arith.mulf %30, %31 : vector<128x4xf32>
    %cst_24 = arith.constant 2.000000e+00 : f32
    %33 = vector.broadcast %cst_24 : f32 to vector<128x4xf32>
    %34 = arith.subf %33, %32 : vector<128x4xf32>
    %35 = arith.mulf %31, %34 : vector<128x4xf32>
    %36 = arith.mulf %30, %35 : vector<128x4xf32>
    %cst_25 = arith.constant 2.000000e+00 : f32
    %37 = vector.broadcast %cst_25 : f32 to vector<128x4xf32>
    %38 = arith.subf %37, %36 : vector<128x4xf32>
    %39 = arith.mulf %35, %38 : vector<128x4xf32>
    %c0_26 = arith.constant 0 : index
    %c0_27 = arith.constant 0 : index
    %40 = vector.load %arg11[%c0_26, %c0_27] : memref<4x24xf32, #tpu.memory_space<vmem>>, vector<4x24xf32>
    %cst_28 = arith.constant dense<0.000000e+00> : vector<128x24xf32>
    %41 = tpu.matmul %39, %40, %cst_28 {dimension_numbers = #tpu.dot_dimension_numbers<[1], [0], [0], [1], [0, 0, 1, 1], [], []>} : vector<128x4xf32>, vector<4x24xf32>, vector<128x24xf32> -> vector<128x24xf32>
    %42 = arith.mulf %28, %41 : vector<128x24xf32>
    %cst_29 = arith.constant 0.000000e+00 : f32
    %43 = vector.broadcast %cst_29 : f32 to vector<128x72xf32>
    %44 = tpu.concatenate %12, %42, %43 in 1 : vector<128x32xf32>, vector<128x24xf32>, vector<128x72xf32> -> vector<128x128xf32>
    %c0_30 = arith.constant 0 : index
    %c0_31 = arith.constant 0 : index
    %45 = vector.load %arg12[%c0_30, %c0_31] : memref<128x128xf32, #tpu.memory_space<vmem>>, vector<128x128xf32>
    tpu.vector_store %arg12[%c0_30, %c0_31], %44 {strides = array<i32>} : memref<128x128xf32, #tpu.memory_space<vmem>>, vector<128x128xf32>,
    return
  }
  func.func @transform_0(%arg0: i32) -> (i32, i32) {
    %c0_i32 = arith.constant 0 : i32
    %c0_i32_0 = arith.constant 0 : i32
    return %arg0, %c0_i32 : i32, i32
  }
  func.func @transform_1(%arg0: i32) -> (i32, i32) {
    %c0_i32 = arith.constant 0 : i32
    %c0_i32_0 = arith.constant 0 : i32
    %c0_i32_1 = arith.constant 0 : i32
    return %c0_i32, %c0_i32_0 : i32, i32
  }
  func.func @transform_2(%arg0: i32) -> (i32, i32) {
    %c0_i32 = arith.constant 0 : i32
    %c0_i32_0 = arith.constant 0 : i32
    %c0_i32_1 = arith.constant 0 : i32
    return %c0_i32, %c0_i32_0 : i32, i32
  }
  func.func @transform_3(%arg0: i32) -> (i32, i32) {
    %c0_i32 = arith.constant 0 : i32
    %c0_i32_0 = arith.constant 0 : i32
    %c0_i32_1 = arith.constant 0 : i32
    return %c0_i32, %c0_i32_0 : i32, i32
  }
  func.func @transform_4(%arg0: i32) -> (i32, i32) {
    %c0_i32 = arith.constant 0 : i32
    %c0_i32_0 = arith.constant 0 : i32
    %c0_i32_1 = arith.constant 0 : i32
    return %c0_i32, %c0_i32_0 : i32, i32
  }
  func.func @transform_5(%arg0: i32) -> (i32, i32) {
    %c0_i32 = arith.constant 0 : i32
    %c0_i32_0 = arith.constant 0 : i32
    %c0_i32_1 = arith.constant 0 : i32
    return %c0_i32, %c0_i32_0 : i32, i32
  }
  func.func @transform_6(%arg0: i32) -> (i32, i32) {
    %c0_i32 = arith.constant 0 : i32
    %c0_i32_0 = arith.constant 0 : i32
    %c0_i32_1 = arith.constant 0 : i32
    return %c0_i32, %c0_i32_0 : i32, i32
  }
  func.func @transform_7(%arg0: i32) -> (i32, i32) {
    %c0_i32 = arith.constant 0 : i32
    %c0_i32_0 = arith.constant 0 : i32
    %c0_i32_1 = arith.constant 0 : i32
    return %c0_i32, %c0_i32_0 : i32, i32
  }
  func.func @transform_8(%arg0: i32) -> (i32, i32) {
    %c0_i32 = arith.constant 0 : i32
    %c0_i32_0 = arith.constant 0 : i32
    %c0_i32_1 = arith.constant 0 : i32
    return %c0_i32, %c0_i32_0 : i32, i32
  }
  func.func @transform_9(%arg0: i32) -> (i32, i32) {
    %c0_i32 = arith.constant 0 : i32
    %c0_i32_0 = arith.constant 0 : i32
    %c0_i32_1 = arith.constant 0 : i32
    return %c0_i32, %c0_i32_0 : i32, i32
  }
  func.func @transform_10(%arg0: i32) -> (i32, i32) {
    %c0_i32 = arith.constant 0 : i32
    %c0_i32_0 = arith.constant 0 : i32
    %c0_i32_1 = arith.constant 0 : i32
    return %c0_i32, %c0_i32_0 : i32, i32
  }
  func.func @transform_11(%arg0: i32) -> (i32, i32) {
    %c0_i32 = arith.constant 0 : i32
    %c0_i32_0 = arith.constant 0 : i32
    return %arg0, %c0_i32 : i32, i32
  }
}

</mosaic_0001>

<bundles_post_ra>
// kernel: tpu_custom_call.1
= control target key start
LH: loop header
LB: loop body
LE: loop exit
PB: predicated region body
PF: predicated region fallthrough
CT: control target
= control target key end

     0   :  { %vm65_vm0 = vcmask 195584   ;;  %s2905_s0 = inlined_call_operand.vmem [shape: f32[128,24], index: 0, kind: input, shape index: {}]   ;;  %s2906_s1 = inlined_call_operand.vmem [shape: f32[24,16], index: 1, kind: input, shape index: {}]   ;;  %s2907_s2 = inlined_call_operand.vmem [shape: f32[1,16], index: 2, kind: input, shape index: {}]   ;;  %s2908_s3 = inlined_call_operand.vmem [shape: f32[16,32], index: 3, kind: input, shape index: {}]   ;;  %s2909_s4 = inlined_call_operand.vmem [shape: f32[1,32], index: 4, kind: input, shape index: {}]   ;;  %s2910_s5 = inlined_call_operand.vmem [shape: f32[32,16], index: 5, kind: input, shape index: {}]   ;;  %s2911_s6 = inlined_call_operand.vmem [shape: f32[1,16], index: 6, kind: input, shape index: {}]   ;;  %s2912_s7 = inlined_call_operand.vmem [shape: f32[16,24], index: 7, kind: input, shape index: {}]   ;;  %s2913_s8 = inlined_call_operand.vmem [shape: f32[1,24], index: 8, kind: input, shape index: {}]   ;;  %s2914_s9 = inlined_call_operand.vmem [shape: f32[24,4], index: 9, kind: input, shape index: {}]   ;;  %s2915_s10 = inlined_call_operand.vmem [shape: f32[4,24], index: 10, kind: input, shape index: {}]   ;;  %s2916_s11 = inlined_call_operand.hbm [shape: f32[128,128], index: 11, kind: output, shape index: {}]  }
   0x1   :  { %v55_v0 = vld [vmem:[%s2906_s1] sm:$0xff]  ;;  %v56_v1 = vld [vmem:[%s2906_s1 + $0x8] sm:$0xff]  ;;  %v57_v4 = vld [vmem:[%s2906_s1 + $0x10] sm:$0xff] }
   0x2   :  { %v2051_v2 = vpack.c.bf16 %v56_v1, %v55_v0  ;;  %v39_v3 = vld [vmem:[%s2905_s0] sm:$0xff]  ;;  %v40_v5 = vld [vmem:[%s2905_s0 + $0x8] sm:$0xff] }
   0x3   :  { %1883 = vmatprep.mubr.msk.f32.mxu0 %vm65_vm0, %v39_v3 }
   0x4   :  { %2052 = vmatprep.subr.bf16.mxu0 %v2051_v2 }
   0x5   :  { %2054 = vmatpush3.bf16.msra.mxu0 %v2051_v2 }
   0x6   :  { %1881 = vmatprep.subr.mxu0 %v57_v4 }
   0x7   :  { %16 = vsyncpa [#allocation3], 0  ;;  %v41_v6 = vld [vmem:[%s2905_s0 + $0x10] sm:$0xff]  ;;  %v42_v7 = vld [vmem:[%s2905_s0 + $0x18] sm:$0xff]  ;;  %vm284_vm1 = vcmask 130048   ;;  %vm505_vm2 = vcmask 261120  }
   0x8   :  { %v43_v8 = vld [vmem:[%s2905_s0 + $0x20] sm:$0xff]  ;;  %v44_v9 = vld [vmem:[%s2905_s0 + $0x28] sm:$0xff]  ;;  %v45_v10 = vld [vmem:[%s2905_s0 + $0x30] sm:$0xff]  ;;  %vm1371_vm3 = vcmask 1043456   ;;  %vm1322_vm4 = vcmask 31744   ;;  %vm1616_vm5 = vcmask 457728  }
   0x9   :  { %1882 = vmatpush3.msra.mxu0 %v57_v4  ;;  %v46_v11 = vld [vmem:[%s2905_s0 + $0x38] sm:$0xff]  ;;  %v47_v12 = vld [vmem:[%s2905_s0 + $0x40] sm:$0xff]  ;;  %v48_v13 = vld [vmem:[%s2905_s0 + $0x48] sm:$0xff]  ;;  %s2264_s18 = smov [#allocation2]  }
   0xa   :  { %1884 = vmatmul.mubr.msk.f32.vlgmr.msra.gmra.mrb[0].mxu0 %vm65_vm0, %v40_v5  ;;  %v49_v14 = vld [vmem:[%s2905_s0 + $0x50] sm:$0xff]  ;;  %v50_v15 = vld [vmem:[%s2905_s0 + $0x58] sm:$0xff]  ;;  %v51_v16 = vld [vmem:[%s2905_s0 + $0x60] sm:$0xff]  ;;  %s1654_s19 = sshll.u32 %s2264_s18, 4  ;;  %s1655_s19 = int_to_ptr.vmem [resolvable:$true] %s1654_s19 }
   0xb   :  { %1886 = vmatprep.mubr.msk.f32.mxu0 %vm65_vm0, %v41_v6  ;;  %v52_v17 = vld [vmem:[%s2905_s0 + $0x68] sm:$0xff]  ;;  %v53_v18 = vld [vmem:[%s2905_s0 + $0x70] sm:$0xff]  ;;  %v54_v19 = vld [vmem:[%s2905_s0 + $0x78] sm:$0xff]  ;;  %s2239_s20 = scalar_lea.vmem %s1655_s19, 2048  ;;  %p2244_p1 = scmp.lt.s32.totalorder %s1655_s19, %s1655_s19 }
   0xc   :  { %v275_v20 = vld [vmem:[%s2908_s3] sm:$0xff]  ;;  %v276_v21 = vld [vmem:[%s2908_s3 + $0x8] sm:$0xff]  ;;  %v496_v39 = vld [vmem:[%s2910_s5 + $0x10] sm:$0xff]  ;;  %p2240_p0 = scmp.ne.s32.totalorder %s1655_s19, %s2239_s20  ;;  %p2245_p2 = scmp.lt.s32.totalorder %s2239_s20, %s2239_s20 }
   0xd   :  { %v2055_v22 = vpack.c.bf16 %v276_v21, %v275_v20  ;;  %v494_v23 = vld [vmem:[%s2910_s5] sm:$0xff]  ;;  %v495_v24 = vld [vmem:[%s2910_s5 + $0x8] sm:$0xff]  ;;  %v497_v40 = vld [vmem:[%s2910_s5 + $0x18] sm:$0xff] }
   0xe   :  { %1887 = vmatmul.mubr.msk.f32.gmra.mrb[2].mxu0 %vm65_vm0, %v42_v7  ;;  %v2059_v25 = vpack.c.bf16 %v495_v24, %v494_v23  ;;  %v2415_v26 = vld [vmem:[%s2907_s2] ss:$0 sm:$0xff]  ;;  %v2063_v46 = vpack.c.bf16 %v497_v40, %v496_v39  ;;  %p2246_p3 = por %p2245_p2, %p2244_p1 }
   0xf   :  { %1889 = vmatprep.mubr.msk.f32.mxu0 %vm65_vm0, %v43_v8  ;;  %2056 = vmatprep.subr.bf16.mxu1 %v2055_v22 }
  0x10   :  { %2058 = vmatpush3.bf16.msra.mxu1 %v2055_v22  ;;  %p2247_p4 = pnand %p2246_p3, %p2240_p0 }
  0x11   :  { %2060 = vmatprep.subr.bf16.mxu1 %v2059_v25 }
  0x12   :  { %1890 = vmatmul.mubr.msk.f32.gmra.mrb[4].mxu0 %vm65_vm0, %v44_v9 }
  0x13   :  { %1892 = vmatprep.mubr.msk.f32.mxu0 %vm65_vm0, %v45_v10 }
  0x16   :  { %1893 = vmatmul.mubr.msk.f32.gmra.mrb[6].mxu0 %vm65_vm0, %v46_v11 }
  0x17   :  { %1895 = vmatprep.mubr.msk.f32.mxu0 %vm65_vm0, %v47_v12 }
  0x1a   :  { %1896 = vmatmul.mubr.msk.f32.gmra.mrb[8].mxu0 %vm65_vm0, %v48_v13 }
  0x1b   :  { %1898 = vmatprep.mubr.msk.f32.mxu0 %vm65_vm0, %v49_v14  ;;  %v715_v14 = vld [vmem:[%s2912_s7] sm:$0xff] }
  0x1e   :  { %1899 = vmatmul.mubr.msk.f32.gmra.mrb[10].mxu0 %vm65_vm0, %v50_v15  ;;  %v716_v15 = vld [vmem:[%s2912_s7 + $0x8] sm:$0xff] }
  0x1f   :  { %1901 = vmatprep.mubr.msk.f32.mxu0 %vm65_vm0, %v51_v16  ;;  %v2067_v16 = vpack.c.bf16 %v716_v15, %v715_v14 }
  0x21   :  { %2068 = vmatprep.subr.bf16.mxu0 %v2067_v16 }
  0x22   :  { %1902 = vmatmul.mubr.msk.f32.gmra.mrb[12].mxu0 %vm65_vm0, %v52_v17  ;;  %v2464_v17 = vld [vmem:[%s2909_s4] ss:$0 sm:$0xff] }
  0x23   :  { %1904 = vmatprep.mubr.msk.f32.mxu0 %vm65_vm0, %v53_v18  ;;  %2070 = vmatpush3.bf16.msra.mxu0 %v2067_v16 }
  0x26   :  { %1905 = vmatmul.mubr.msk.f32.gmra.mrb[14].mxu0 %vm65_vm0, %v54_v19 }
  0xdd   :  { %v1885_v27 = vpop.f32.mrb[0].mxu0 }
  0xde   :  { %v186_v28 = vadd.f32 %v1885_v27, %v2415_v26  ;;  %v180_v29 = vpop.f32.mrb[1].mxu0 }
  0xdf   :  { %v181_v30 = vadd.f32 %v2415_v26, %v180_v29 }
  0xe1   :  { %2079 = vtanh.f32 %v181_v30  ;;  %v1888_v31 = vpop.f32.mrb[2].mxu0 }
  0xe2   :  { %2081 = vtanh.f32 %v186_v28  ;;  %v196_v32 = vadd.f32 %v1888_v31, %v2415_v26  ;;  %v190_v33 = vpop.f32.mrb[3].mxu0 }
  0xe3   :  { %v191_v34 = vadd.f32 %v2415_v26, %v190_v33 }
  0xe5   :  { %2083 = vtanh.f32 %v191_v34  ;;  %v1891_v35 = vpop.f32.mrb[4].mxu0 }
  0xe6   :  { %2085 = vtanh.f32 %v196_v32  ;;  %v206_v36 = vadd.f32 %v1891_v35, %v2415_v26  ;;  %v200_v37 = vpop.f32.mrb[5].mxu0 }
  0xe7   :  { %v201_v38 = vadd.f32 %v2415_v26, %v200_v37 }
  0xe8   :  { %2087 = vtanh.f32 %v206_v36 }
  0xe9   :  { %2089 = vtanh.f32 %v201_v38  ;;  %v1894_v41 = vpop.f32.mrb[6].mxu0 }
  0xea   :  { %v216_v42 = vadd.f32 %v1894_v41, %v2415_v26  ;;  %v210_v43 = vpop.f32.mrb[7].mxu0 }
  0xeb   :  { %v2080_v44 = vpop.eup %2079  ;;  %v211_v45 = vadd.f32 %v2415_v26, %v210_v43 }
  0xec   :  { %v2082_v47 = vpop.eup %2081  ;;  %2091 = vtanh.f32 %v216_v42  ;;  %1911 = vmatprep.mubr.msk.f32.mxu1 %vm284_vm1, %v2080_v44 }
  0xed   :  { %2093 = vtanh.f32 %v211_v45  ;;  %v1897_v48 = vpop.f32.mrb[8].mxu0  ;;  %1912 = vmatmul.mubr.msk.f32.vlgmr.msra.gmra.mrb[0].mxu1 %vm284_vm1, %v2082_v47 }
  0xee   :  { %v226_v49 = vadd.f32 %v1897_v48, %v2415_v26  ;;  %v220_v50 = vpop.f32.mrb[9].mxu0  ;;  %2062 = vmatpush3.bf16.msra.mxu1 %v2059_v25 }
  0xef   :  { %v2084_v51 = vpop.eup %2083  ;;  %v221_v52 = vadd.f32 %v2415_v26, %v220_v50  ;;  %2064 = vmatprep.subr.bf16.mxu1 %v2063_v46 }
  0xf0   :  { %v2086_v53 = vpop.eup %2085  ;;  %2095 = vtanh.f32 %v226_v49  ;;  %1914 = vmatprep.mubr.msk.f32.mxu1 %vm284_vm1, %v2084_v51 }
  0xf1   :  { %2097 = vtanh.f32 %v221_v52  ;;  %v1900_v54 = vpop.f32.mrb[10].mxu0  ;;  %1915 = vmatmul.mubr.msk.f32.gmra.mrb[2].mxu1 %vm284_vm1, %v2086_v53 }
  0xf2   :  { %v2088_v55 = vpop.eup %2087  ;;  %v236_v56 = vadd.f32 %v1900_v54, %v2415_v26  ;;  %v230_v57 = vpop.f32.mrb[11].mxu0  ;;  %2066 = vmatpush3.bf16.msra.mxu1 %v2063_v46 }
  0xf3   :  { %v2090_v58 = vpop.eup %2089  ;;  %v231_v59 = vadd.f32 %v2415_v26, %v230_v57 }
  0xf4   :  { %2099 = vtanh.f32 %v236_v56  ;;  %1917 = vmatprep.mubr.msk.f32.mxu1 %vm284_vm1, %v2090_v58 }
  0xf5   :  { %2101 = vtanh.f32 %v231_v59  ;;  %v1903_v60 = vpop.f32.mrb[12].mxu0  ;;  %1918 = vmatmul.mubr.msk.f32.gmra.mrb[4].mxu1 %vm284_vm1, %v2088_v55 }
  0xf6   :  { %v2092_v61 = vpop.eup %2091  ;;  %v246_v62 = vadd.f32 %v1903_v60, %v2415_v26  ;;  %v240_v63 = vpop.f32.mrb[13].mxu0 }
  0xf7   :  { %v2094_v0 = vpop.eup %2093  ;;  %v241_v1 = vadd.f32 %v2415_v26, %v240_v63 }
  0xf8   :  { %2103 = vtanh.f32 %v246_v62  ;;  %1920 = vmatprep.mubr.msk.f32.mxu1 %vm284_vm1, %v2094_v0 }
  0xf9   :  { %2105 = vtanh.f32 %v241_v1  ;;  %v1906_v2 = vpop.f32.mrb[14].mxu0  ;;  %1921 = vmatmul.mubr.msk.f32.gmra.mrb[6].mxu1 %vm284_vm1, %v2092_v61 }
  0xfa   :  { %v2096_v3 = vpop.eup %2095  ;;  %v256_v4 = vadd.f32 %v1906_v2, %v2415_v26  ;;  %v250_v5 = vpop.f32.mrb[15].mxu0  ;;  %v2549_v2 = vld [vmem:[%s2911_s6] ss:$0 sm:$0xff] }
  0xfb   :  { %v2098_v6 = vpop.eup %2097  ;;  %v251_v7 = vadd.f32 %v2415_v26, %v250_v5 }
  0xfc   :  { %2107 = vtanh.f32 %v256_v4  ;;  %1923 = vmatprep.mubr.msk.f32.mxu1 %vm284_vm1, %v2098_v6 }
  0xfd   :  { %2109 = vtanh.f32 %v251_v7  ;;  %1924 = vmatmul.mubr.msk.f32.gmra.mrb[8].mxu1 %vm284_vm1, %v2096_v3 }
  0xfe   :  { %v2100_v8 = vpop.eup %2099 }
  0xff   :  { %v2102_v9 = vpop.eup %2101 }
 0x100   :  { %1926 = vmatprep.mubr.msk.f32.mxu1 %vm284_vm1, %v2102_v9 }
 0x101   :  { %1927 = vmatmul.mubr.msk.f32.gmra.mrb[10].mxu1 %vm284_vm1, %v2100_v8 }
 0x102   :  { %v2104_v10 = vpop.eup %2103 }
 0x103   :  { %v2106_v11 = vpop.eup %2105 }
 0x104   :  { %1929 = vmatprep.mubr.msk.f32.mxu1 %vm284_vm1, %v2106_v11 }
 0x105   :  { %1930 = vmatmul.mubr.msk.f32.gmra.mrb[12].mxu1 %vm284_vm1, %v2104_v10 }
 0x106   :  { %v2108_v12 = vpop.eup %2107 }
 0x107   :  { %v2110_v13 = vpop.eup %2109 }
 0x108   :  { %1932 = vmatprep.mubr.msk.f32.mxu1 %vm284_vm1, %v2110_v13 }
 0x109   :  { %1933 = vmatmul.mubr.msk.f32.gmra.mrb[14].mxu1 %vm284_vm1, %v2108_v12 }
 0x1c0   :  { %v1913_v18 = vpop.f32.mrb[0].mxu1 }
 0x1c1   :  { %v405_v19 = vadd.f32 %v1913_v18, %v2464_v17  ;;  %v399_v20 = vpop.f32.mrb[1].mxu1 }
 0x1c2   :  { %v400_v21 = vadd.f32 %v2464_v17, %v399_v20 }
 0x1c4   :  { %2111 = vtanh.f32 %v400_v21  ;;  %v1916_v22 = vpop.f32.mrb[2].mxu1 }
 0x1c5   :  { %2113 = vtanh.f32 %v405_v19  ;;  %v415_v23 = vadd.f32 %v1916_v22, %v2464_v17  ;;  %v409_v24 = vpop.f32.mrb[3].mxu1 }
 0x1c6   :  { %v410_v25 = vadd.f32 %v2464_v17, %v409_v24 }
 0x1c8   :  { %2115 = vtanh.f32 %v410_v25  ;;  %v1919_v26 = vpop.f32.mrb[4].mxu1 }
 0x1c9   :  { %2117 = vtanh.f32 %v415_v23  ;;  %v425_v27 = vadd.f32 %v1919_v26, %v2464_v17  ;;  %v419_v28 = vpop.f32.mrb[5].mxu1 }
 0x1ca   :  { %v420_v29 = vadd.f32 %v2464_v17, %v419_v28 }
 0x1cb   :  { %2119 = vtanh.f32 %v425_v27 }
 0x1cc   :  { %2121 = vtanh.f32 %v420_v29  ;;  %v1922_v30 = vpop.f32.mrb[6].mxu1 }
 0x1cd   :  { %v435_v31 = vadd.f32 %v1922_v30, %v2464_v17  ;;  %v429_v32 = vpop.f32.mrb[7].mxu1 }
 0x1ce   :  { %v2473_v33 = vpop.eup %2111  ;;  %v430_v34 = vadd.f32 %v2464_v17, %v429_v32 }
 0x1cf   :  { %v2476_v35 = vpop.eup %2113  ;;  %2123 = vtanh.f32 %v435_v31  ;;  %1943 = vmatprep.mubr.msk.f32.mxu1 %vm505_vm2, %v2473_v33 }
 0x1d0   :  { %2125 = vtanh.f32 %v430_v34  ;;  %v1925_v36 = vpop.f32.mrb[8].mxu1  ;;  %1944 = vmatmul.mubr.msk.f32.vlgmr.msra.gmra.mrb[16].mxu1 %vm505_vm2, %v2476_v35 }
 0x1d1   :  { %v445_v37 = vadd.f32 %v1925_v36, %v2464_v17  ;;  %v439_v38 = vpop.f32.mrb[9].mxu1 }
 0x1d2   :  { %v2483_v39 = vpop.eup %2115  ;;  %v440_v40 = vadd.f32 %v2464_v17, %v439_v38 }
 0x1d3   :  { %v2486_v41 = vpop.eup %2117  ;;  %2127 = vtanh.f32 %v445_v37  ;;  %1946 = vmatprep.mubr.msk.f32.mxu1 %vm505_vm2, %v2483_v39 }
 0x1d4   :  { %2129 = vtanh.f32 %v440_v40  ;;  %v1928_v42 = vpop.f32.mrb[10].mxu1  ;;  %1947 = vmatmul.mubr.msk.f32.gmra.mrb[18].mxu1 %vm505_vm2, %v2486_v41 }
 0x1d5   :  { %v2492_v43 = vpop.eup %2119  ;;  %v455_v44 = vadd.f32 %v1928_v42, %v2464_v17  ;;  %v449_v45 = vpop.f32.mrb[11].mxu1 }
 0x1d6   :  { %v2495_v46 = vpop.eup %2121  ;;  %v450_v47 = vadd.f32 %v2464_v17, %v449_v45 }
 0x1d7   :  { %2131 = vtanh.f32 %v455_v44  ;;  %1949 = vmatprep.mubr.msk.f32.mxu1 %vm505_vm2, %v2495_v46 }
 0x1d8   :  { %2133 = vtanh.f32 %v450_v47  ;;  %v1931_v48 = vpop.f32.mrb[12].mxu1  ;;  %1950 = vmatmul.mubr.msk.f32.gmra.mrb[20].mxu1 %vm505_vm2, %v2492_v43 }
 0x1d9   :  { %v2502_v49 = vpop.eup %2123  ;;  %v465_v50 = vadd.f32 %v1931_v48, %v2464_v17  ;;  %v459_v51 = vpop.f32.mrb[13].mxu1 }
 0x1da   :  { %v2505_v52 = vpop.eup %2125  ;;  %v460_v53 = vadd.f32 %v2464_v17, %v459_v51 }
 0x1db   :  { %2135 = vtanh.f32 %v465_v50  ;;  %1952 = vmatprep.mubr.msk.f32.mxu1 %vm505_vm2, %v2505_v52 }
 0x1dc   :  { %2137 = vtanh.f32 %v460_v53  ;;  %v1934_v54 = vpop.f32.mrb[14].mxu1  ;;  %1953 = vmatmul.mubr.msk.f32.gmra.mrb[22].mxu1 %vm505_vm2, %v2502_v49 }
 0x1dd   :  { %v2512_v55 = vpop.eup %2127  ;;  %v475_v56 = vadd.f32 %v1934_v54, %v2464_v17  ;;  %v469_v57 = vpop.f32.mrb[15].mxu1 }
 0x1de   :  { %v2515_v58 = vpop.eup %2129  ;;  %v470_v59 = vadd.f32 %v2464_v17, %v469_v57 }
 0x1df   :  { %2139 = vtanh.f32 %v475_v56  ;;  %1955 = vmatprep.mubr.msk.f32.mxu1 %vm505_vm2, %v2515_v58 }
 0x1e0   :  { %2141 = vtanh.f32 %v470_v59  ;;  %1956 = vmatmul.mubr.msk.f32.gmra.mrb[24].mxu1 %vm505_vm2, %v2512_v55 }
 0x1e1   :  { %v2522_v60 = vpop.eup %2131 }
 0x1e2   :  { %v2524_v61 = vpop.eup %2133 }
 0x1e3   :  { %1958 = vmatprep.mubr.msk.f32.mxu1 %vm505_vm2, %v2524_v61 }
 0x1e4   :  { %1959 = vmatmul.mubr.msk.f32.gmra.mrb[26].mxu1 %vm505_vm2, %v2522_v60 }
 0x1e5   :  { %v2530_v62 = vpop.eup %2135 }
 0x1e6   :  { %v2532_v63 = vpop.eup %2137 }
 0x1e7   :  { %1961 = vmatprep.mubr.msk.f32.mxu1 %vm505_vm2, %v2532_v63 }
 0x1e8   :  { %1962 = vmatmul.mubr.msk.f32.gmra.mrb[28].mxu1 %vm505_vm2, %v2530_v62 }
 0x1e9   :  { %v2538_v0 = vpop.eup %2139 }
 0x1ea   :  { %2919 = vst [vmem:[#allocation5_spill] sm:$0xff] %v2538_v0  ;;  %v2540_v1 = vpop.eup %2141 }
 0x1eb   :  { %2920 = vst [vmem:[#allocation6_spill] sm:$0xff] %v2540_v1  ;;  %1964 = vmatprep.mubr.msk.f32.mxu1 %vm505_vm2, %v2540_v1 }
 0x1ec   :  { %1965 = vmatmul.mubr.msk.f32.gmra.mrb[30].mxu1 %vm505_vm2, %v2538_v0 }
 0x2a3   :  { %v1945_v3 = vpop.f32.mrb[16].mxu1 }
 0x2a4   :  { %v626_v4 = vadd.f32 %v1945_v3, %v2549_v2  ;;  %v620_v5 = vpop.f32.mrb[17].mxu1  ;;  %v1013_v3 = vld [vmem:[%s2914_s9] sm:$0xff] }
 0x2a5   :  { %v621_v6 = vadd.f32 %v2549_v2, %v620_v5 }
 0x2a7   :  { %2143 = vtanh.f32 %v621_v6  ;;  %v1948_v7 = vpop.f32.mrb[18].mxu1  ;;  %v1716_v6 = vld [vmem:[%s2913_s8] ss:$0 sm:$0xff] }
 0x2a8   :  { %2145 = vtanh.f32 %v626_v4  ;;  %v636_v8 = vadd.f32 %v1948_v7, %v2549_v2  ;;  %v630_v9 = vpop.f32.mrb[19].mxu1  ;;  %v1014_v4 = vld [vmem:[%s2914_s9 + $0x8] sm:$0xff] }
 0x2a9   :  { %v631_v10 = vadd.f32 %v2549_v2, %v630_v9  ;;  %v2071_v5 = vpack.c.bf16 %v1014_v4, %v1013_v3 }
 0x2ab   :  { %2147 = vtanh.f32 %v631_v10  ;;  %v1951_v11 = vpop.f32.mrb[20].mxu1  ;;  %2072 = vmatprep.subr.bf16.mxu1 %v2071_v5 }
 0x2ac   :  { %2149 = vtanh.f32 %v636_v8  ;;  %v646_v12 = vadd.f32 %v1951_v11, %v2549_v2  ;;  %v640_v13 = vpop.f32.mrb[21].mxu1  ;;  %2074 = vmatpush3.bf16.msra.mxu1 %v2071_v5 }
 0x2ad   :  { %v641_v14 = vadd.f32 %v2549_v2, %v640_v13 }
 0x2ae   :  { %2151 = vtanh.f32 %v646_v12 }
 0x2af   :  { %2153 = vtanh.f32 %v641_v14  ;;  %v1954_v15 = vpop.f32.mrb[22].mxu1 }
 0x2b0   :  { %v656_v16 = vadd.f32 %v1954_v15, %v2549_v2  ;;  %v650_v17 = vpop.f32.mrb[23].mxu1 }
 0x2b1   :  { %v2144_v18 = vpop.eup %2143  ;;  %v651_v19 = vadd.f32 %v2549_v2, %v650_v17 }
 0x2b2   :  { %v2146_v20 = vpop.eup %2145  ;;  %2155 = vtanh.f32 %v656_v16  ;;  %1971 = vmatprep.mubr.msk.f32.mxu0 %vm284_vm1, %v2144_v18 }
 0x2b3   :  { %2157 = vtanh.f32 %v651_v19  ;;  %v1957_v21 = vpop.f32.mrb[24].mxu1  ;;  %1972 = vmatmul.mubr.msk.f32.vlgmr.msra.gmra.mrb[16].mxu0 %vm284_vm1, %v2146_v20 }
 0x2b4   :  { %v666_v22 = vadd.f32 %v1957_v21, %v2549_v2  ;;  %v660_v23 = vpop.f32.mrb[25].mxu1 }
 0x2b5   :  { %v2148_v24 = vpop.eup %2147  ;;  %v661_v25 = vadd.f32 %v2549_v2, %v660_v23 }
 0x2b6   :  { %v2150_v26 = vpop.eup %2149  ;;  %2159 = vtanh.f32 %v666_v22  ;;  %1974 = vmatprep.mubr.msk.f32.mxu0 %vm284_vm1, %v2148_v24 }
 0x2b7   :  { %2161 = vtanh.f32 %v661_v25  ;;  %v1960_v27 = vpop.f32.mrb[26].mxu1  ;;  %1975 = vmatmul.mubr.msk.f32.gmra.mrb[18].mxu0 %vm284_vm1, %v2150_v26 }
 0x2b8   :  { %v2152_v28 = vpop.eup %2151  ;;  %v676_v29 = vadd.f32 %v1960_v27, %v2549_v2  ;;  %v670_v30 = vpop.f32.mrb[27].mxu1 }
 0x2b9   :  { %v2154_v31 = vpop.eup %2153  ;;  %v671_v32 = vadd.f32 %v2549_v2, %v670_v30 }
 0x2ba   :  { %2163 = vtanh.f32 %v676_v29  ;;  %1977 = vmatprep.mubr.msk.f32.mxu0 %vm284_vm1, %v2154_v31 }
 0x2bb   :  { %2165 = vtanh.f32 %v671_v32  ;;  %v1963_v34 = vpop.f32.mrb[28].mxu1  ;;  %1978 = vmatmul.mubr.msk.f32.gmra.mrb[20].mxu0 %vm284_vm1, %v2152_v28 }
 0x2bc   :  { %v2156_v36 = vpop.eup %2155  ;;  %v686_v37 = vadd.f32 %v1963_v34, %v2549_v2  ;;  %v680_v38 = vpop.f32.mrb[29].mxu1 }
 0x2bd   :  { %v2158_v40 = vpop.eup %2157  ;;  %v681_v42 = vadd.f32 %v2549_v2, %v680_v38 }
 0x2be   :  { %2167 = vtanh.f32 %v686_v37  ;;  %1980 = vmatprep.mubr.msk.f32.mxu0 %vm284_vm1, %v2158_v40 }
 0x2bf   :  { %2169 = vtanh.f32 %v681_v42  ;;  %v1966_v44 = vpop.f32.mrb[30].mxu1  ;;  %1981 = vmatmul.mubr.msk.f32.gmra.mrb[22].mxu0 %vm284_vm1, %v2156_v36 }
 0x2c0   :  { %v2160_v45 = vpop.eup %2159  ;;  %v696_v47 = vadd.f32 %v1966_v44, %v2549_v2  ;;  %v690_v48 = vpop.f32.mrb[31].mxu1  ;;  %v1015_v44 = vld [vmem:[%s2914_s9 + $0x10] sm:$0xff] }
 0x2c1   :  { %v2162_v50 = vpop.eup %2161  ;;  %v691_v51 = vadd.f32 %v2549_v2, %v690_v48  ;;  %1999 = vmatprep.subr.mxu1 %v1015_v44 }
 0x2c2   :  { %2171 = vtanh.f32 %v696_v47  ;;  %1983 = vmatprep.mubr.msk.f32.mxu0 %vm284_vm1, %v2162_v50  ;;  %2000 = vmatpush3.msra.mxu1 %v1015_v44 }
 0x2c3   :  { %2173 = vtanh.f32 %v691_v51  ;;  %1984 = vmatmul.mubr.msk.f32.gmra.mrb[24].mxu0 %vm284_vm1, %v2160_v45 }
 0x2c4   :  { %v2164_v53 = vpop.eup %2163 }
 0x2c5   :  { %v2166_v54 = vpop.eup %2165 }
 0x2c6   :  { %1986 = vmatprep.mubr.msk.f32.mxu0 %vm284_vm1, %v2166_v54 }
 0x2c7   :  { %1987 = vmatmul.mubr.msk.f32.gmra.mrb[26].mxu0 %vm284_vm1, %v2164_v53 }
 0x2c8   :  { %v2168_v56 = vpop.eup %2167 }
 0x2c9   :  { %v2170_v57 = vpop.eup %2169 }
 0x2ca   :  { %1989 = vmatprep.mubr.msk.f32.mxu0 %vm284_vm1, %v2170_v57 }
 0x2cb   :  { %1990 = vmatmul.mubr.msk.f32.gmra.mrb[28].mxu0 %vm284_vm1, %v2168_v56 }
 0x2cc   :  { %v2172_v59 = vpop.eup %2171 }
 0x2cd   :  { %v2174_v2 = vpop.eup %2173 }
 0x2ce   :  { %1992 = vmatprep.mubr.msk.f32.mxu0 %vm284_vm1, %v2174_v2 }
 0x2cf   :  { %1993 = vmatmul.mubr.msk.f32.gmra.mrb[30].mxu0 %vm284_vm1, %v2172_v59 }
 0x386   :  { %v1973_v7 = vpop.f32.mrb[16].mxu0 }
 0x387   :  { %v838_v8 = vpop.f32.mrb[17].mxu0  ;;  %v2594_v10 = vadd.f32 %v1973_v7, %v1716_v6 }
 0x388   :  { %v2592_v9 = vadd.f32 %v1716_v6, %v838_v8 }
 0x389   :  { %v920_v18 = vsel %vm65_vm0, %v2594_v10, -inf }
 0x38a   :  { %v1976_v11 = vpop.f32.mrb[18].mxu0  ;;  %v917_v12 = vsel %vm65_vm0, %v2592_v9, -inf }
 0x38b   :  { %v848_v13 = vpop.f32.mrb[19].mxu0  ;;  %918 = vmax.xlane.f32.xlu0 %v917_v12  ;;  %v2600_v15 = vadd.f32 %v1976_v11, %v1716_v6  ;;  %v1321_v11 = vld [vmem:[%s2915_s10] sm:$0xf]  ;;  %s2263_s10 = smov 32  }
 0x38c   :  { %v2598_v14 = vadd.f32 %v1716_v6, %v848_v13  ;;  %2025 = vmatprep.subr.msk.mxu0 %vm1371_vm3, %v1321_v11 }
 0x38d   :  { %v926_v23 = vsel %vm65_vm0, %v2600_v15, -inf  ;;  %2026 = vmatpush3.msk.msra.mxu0 %vm1371_vm3, %v1321_v11 }
 0x38e   :  { %v1979_v16 = vpop.f32.mrb[20].mxu0  ;;  %v923_v17 = vsel %vm65_vm0, %v2598_v14, -inf }
 0x38f   :  { %v858_v19 = vpop.f32.mrb[21].mxu0  ;;  %924 = vmax.xlane.f32.xlu1 %v923_v17  ;;  %921 = vmax.xlane.f32.xlu0 %v920_v18  ;;  %v2608_v21 = vadd.f32 %v1979_v16, %v1716_v6 }
 0x390   :  { %v2606_v20 = vadd.f32 %v1716_v6, %v858_v19 }
 0x391   :  { %v932_v29 = vsel %vm65_vm0, %v2608_v21, -inf }
 0x392   :  { %v1982_v22 = vpop.f32.mrb[22].mxu0  ;;  %v929_v24 = vsel %vm65_vm0, %v2606_v20, -inf }
 0x393   :  { %v868_v25 = vpop.f32.mrb[23].mxu0  ;;  %927 = vmax.xlane.f32.xlu1 %v926_v23  ;;  %930 = vmax.xlane.f32.xlu0 %v929_v24  ;;  %v2616_v27 = vadd.f32 %v1982_v22, %v1716_v6 }
 0x394   :  { %v2614_v26 = vadd.f32 %v1716_v6, %v868_v25 }
 0x395   :  { %v938_v37 = vsel %vm65_vm0, %v2616_v27, -inf }
 0x396   :  { %v1985_v28 = vpop.f32.mrb[24].mxu0  ;;  %v935_v30 = vsel %vm65_vm0, %v2614_v26, -inf }
 0x397   :  { %v878_v31 = vpop.f32.mrb[25].mxu0  ;;  %933 = vmax.xlane.f32.xlu1 %v932_v29  ;;  %936 = vmax.xlane.f32.xlu0 %v935_v30  ;;  %v2624_v34 = vadd.f32 %v1985_v28, %v1716_v6 }
 0x398   :  { %v2622_v32 = vadd.f32 %v1716_v6, %v878_v31 }
 0x399   :  { %v944_v48 = vsel %vm65_vm0, %v2624_v34, -inf }
 0x39a   :  { %v1988_v36 = vpop.f32.mrb[26].mxu0  ;;  %v941_v38 = vsel %vm65_vm0, %v2622_v32, -inf }
 0x39b   :  { %v888_v40 = vpop.f32.mrb[27].mxu0  ;;  %939 = vmax.xlane.f32.xlu1 %v938_v37  ;;  %942 = vmax.xlane.f32.xlu0 %v941_v38  ;;  %v2635_v45 = vadd.f32 %v1988_v36, %v1716_v6 }
 0x39c   :  { %v2630_v42 = vadd.f32 %v1716_v6, %v888_v40 }
 0x39d   :  { %v950_v57 = vsel %vm65_vm0, %v2635_v45, -inf }
 0x39e   :  { %v1991_v47 = vpop.f32.mrb[28].mxu0  ;;  %v947_v50 = vsel %vm65_vm0, %v2630_v42, -inf }
 0x39f   :  { %v898_v51 = vpop.f32.mrb[29].mxu0  ;;  %945 = vmax.xlane.f32.xlu1 %v944_v48  ;;  %948 = vmax.xlane.f32.xlu0 %v947_v50  ;;  %v2643_v54 = vadd.f32 %v1991_v47, %v1716_v6 }
 0x3a0   :  { %v2641_v53 = vadd.f32 %v1716_v6, %v898_v51 }
 0x3a1   :  { %v956_v5 = vsel %vm65_vm0, %v2643_v54, -inf }
 0x3a2   :  { %v1994_v56 = vpop.f32.mrb[30].mxu0  ;;  %v953_v59 = vsel %vm65_vm0, %v2641_v53, -inf }
 0x3a3   :  { %v908_v2 = vpop.f32.mrb[31].mxu0  ;;  %951 = vmax.xlane.f32.xlu1 %v950_v57  ;;  %954 = vmax.xlane.f32.xlu0 %v953_v59  ;;  %v2651_v4 = vadd.f32 %v1994_v56, %v1716_v6 }
 0x3a4   :  { %v2649_v3 = vadd.f32 %v1716_v6, %v908_v2 }
 0x3a5   :  { %v962_v8 = vsel %vm65_vm0, %v2651_v4, -inf }
 0x3a6   :  { %v959_v7 = vsel %vm65_vm0, %v2649_v3, -inf }
 0x3a7   :  { %957 = vmax.xlane.f32.xlu1 %v956_v5  ;;  %960 = vmax.xlane.f32.xlu0 %v959_v7 }
 0x3ab   :  { %963 = vmax.xlane.f32.xlu1 %v962_v8 }
 0x418   :  { %v919_v6 = vpop.xlane.xlu0 %918 }
 0x419   :  { %v965_v12 = vsub.f32 %v2592_v9, %v919_v6 }
 0x41b   :  { %v981_v13 = vmul.f32 1.442695, %v965_v12 }
 0x41c   :  { %v925_v16 = vpop.xlane.xlu1 %924  ;;  %v922_v17 = vpop.xlane.xlu0 %921 }
 0x41d   :  { %2175 = vpow2.f32 %v981_v13  ;;  %v967_v18 = vsub.f32 %v2598_v14, %v925_v16  ;;  %v966_v19 = vsub.f32 %v2594_v10, %v922_v17 }
 0x41f   :  { %v985_v22 = vmul.f32 1.442695, %v967_v18  ;;  %v983_v23 = vmul.f32 1.442695, %v966_v19 }
 0x420   :  { %v928_v24 = vpop.xlane.xlu1 %927  ;;  %v931_v25 = vpop.xlane.xlu0 %930 }
 0x421   :  { %2177 = vpow2.f32 %v985_v22  ;;  %v968_v28 = vsub.f32 %v2600_v15, %v928_v24  ;;  %v969_v29 = vsub.f32 %v2606_v20, %v931_v25 }
 0x422   :  { %2179 = vpow2.f32 %v983_v23 }
 0x423   :  { %v987_v30 = vmul.f32 1.442695, %v968_v28  ;;  %v989_v9 = vmul.f32 1.442695, %v969_v29 }
 0x424   :  { %v934_v31 = vpop.xlane.xlu1 %933  ;;  %v937_v36 = vpop.xlane.xlu0 %936 }
 0x425   :  { %2181 = vpow2.f32 %v987_v30  ;;  %v970_v37 = vsub.f32 %v2608_v21, %v934_v31  ;;  %v971_v14 = vsub.f32 %v2614_v26, %v937_v36 }
 0x426   :  { %2183 = vpow2.f32 %v989_v9 }
 0x427   :  { %v2669_v10 = vpop.eup %2175  ;;  %v991_v38 = vmul.f32 1.442695, %v970_v37  ;;  %v993_v40 = vmul.f32 1.442695, %v971_v14 }
 0x428   :  { %v940_v44 = vpop.xlane.xlu1 %939  ;;  %2001 = vmatprep.mubr.msk.f32.mxu1 %vm65_vm0, %v2669_v10  ;;  %v943_v15 = vpop.xlane.xlu0 %942 }
 0x429   :  { %2185 = vpow2.f32 %v991_v38  ;;  %v972_v20 = vsub.f32 %v2616_v27, %v940_v44  ;;  %v973_v47 = vsub.f32 %v2622_v32, %v943_v15 }
 0x42a   :  { %2187 = vpow2.f32 %v993_v40 }
 0x42b   :  { %v2675_v48 = vpop.eup %2177  ;;  %v995_v21 = vmul.f32 1.442695, %v972_v20  ;;  %v997_v26 = vmul.f32 1.442695, %v973_v47 }
 0x42c   :  { %v2677_v50 = vpop.eup %2179  ;;  %v946_v51 = vpop.xlane.xlu1 %945 }
 0x42d   :  { %v949_v56 = vpop.xlane.xlu0 %948  ;;  %2189 = vpow2.f32 %v995_v21  ;;  %v974_v57 = vsub.f32 %v2624_v34, %v946_v51  ;;  %2002 = vmatmul.mubr.msk.f32.vlgmr.msra.gmra.mrb[32].mxu1 %vm65_vm0, %v2677_v50 }
 0x42e   :  { %v975_v59 = vsub.f32 %v2630_v42, %v949_v56  ;;  %2191 = vpow2.f32 %v997_v26  ;;  %2004 = vmatprep.mubr.msk.f32.mxu1 %vm65_vm0, %v2675_v48 }
 0x42f   :  { %v2685_v27 = vpop.eup %2181  ;;  %v999_v32 = vmul.f32 1.442695, %v974_v57 }
 0x430   :  { %v1001_v2 = vmul.f32 1.442695, %v975_v59  ;;  %v2687_v5 = vpop.eup %2183  ;;  %v952_v7 = vpop.xlane.xlu1 %951 }
 0x431   :  { %v955_v8 = vpop.xlane.xlu0 %954  ;;  %2193 = vpow2.f32 %v999_v32  ;;  %v976_v34 = vsub.f32 %v2635_v45, %v952_v7  ;;  %2005 = vmatmul.mubr.msk.f32.gmra.mrb[34].mxu1 %vm65_vm0, %v2685_v27 }
 0x432   :  { %v977_v42 = vsub.f32 %v2641_v53, %v955_v8  ;;  %2195 = vpow2.f32 %v1001_v2  ;;  %2007 = vmatprep.mubr.msk.f32.mxu1 %vm65_vm0, %v2687_v5 }
 0x433   :  { %v2695_v11 = vpop.eup %2185  ;;  %v1003_v6 = vmul.f32 1.442695, %v976_v34 }
 0x434   :  { %v1005_v12 = vmul.f32 1.442695, %v977_v42  ;;  %v2697_v13 = vpop.eup %2187  ;;  %v958_v16 = vpop.xlane.xlu1 %957 }
 0x435   :  { %v961_v17 = vpop.xlane.xlu0 %960  ;;  %2197 = vpow2.f32 %v1003_v6  ;;  %v978_v45 = vsub.f32 %v2643_v54, %v958_v16  ;;  %2008 = vmatmul.mubr.msk.f32.gmra.mrb[36].mxu1 %vm65_vm0, %v2695_v11 }
 0x436   :  { %v979_v53 = vsub.f32 %v2649_v3, %v961_v17  ;;  %2199 = vpow2.f32 %v1005_v12  ;;  %2010 = vmatprep.mubr.msk.f32.mxu1 %vm65_vm0, %v2697_v13 }
 0x437   :  { %v2705_v18 = vpop.eup %2189  ;;  %v1007_v19 = vmul.f32 1.442695, %v978_v45 }
 0x438   :  { %v1009_v22 = vmul.f32 1.442695, %v979_v53  ;;  %v2707_v23 = vpop.eup %2191  ;;  %v964_v24 = vpop.xlane.xlu1 %963 }
 0x439   :  { %2201 = vpow2.f32 %v1007_v19  ;;  %v980_v25 = vsub.f32 %v2651_v4, %v964_v24  ;;  %2011 = vmatmul.mubr.msk.f32.gmra.mrb[38].mxu1 %vm65_vm0, %v2705_v18 }
 0x43a   :  { %2203 = vpow2.f32 %v1009_v22  ;;  %2013 = vmatprep.mubr.msk.f32.mxu1 %vm65_vm0, %v2707_v23 }
 0x43b   :  { %v2714_v54 = vpop.eup %2193  ;;  %v1011_v3 = vmul.f32 1.442695, %v980_v25 }
 0x43c   :  { %v2716_v28 = vpop.eup %2195 }
 0x43d   :  { %2205 = vpow2.f32 %v1011_v3  ;;  %2014 = vmatmul.mubr.msk.f32.gmra.mrb[40].mxu1 %vm65_vm0, %v2714_v54 }
 0x43e   :  { %2016 = vmatprep.mubr.msk.f32.mxu1 %vm65_vm0, %v2716_v28 }
 0x43f   :  { %v2722_v4 = vpop.eup %2197 }
 0x440   :  { %v2724_v29 = vpop.eup %2199 }
 0x441   :  { %2017 = vmatmul.mubr.msk.f32.gmra.mrb[42].mxu1 %vm65_vm0, %v2722_v4 }
 0x442   :  { %2019 = vmatprep.mubr.msk.f32.mxu1 %vm65_vm0, %v2724_v29 }
 0x443   :  { %v2730_v30 = vpop.eup %2201 }
 0x444   :  { %v2732_v9 = vpop.eup %2203 }
 0x445   :  { %2020 = vmatmul.mubr.msk.f32.gmra.mrb[44].mxu1 %vm65_vm0, %v2730_v30 }
 0x446   :  { %2022 = vmatprep.mubr.msk.f32.mxu1 %vm65_vm0, %v2732_v9 }
 0x447   :  { %v2738_v31 = vpop.eup %2205 }
 0x449   :  { %2023 = vmatmul.mubr.msk.f32.gmra.mrb[46].mxu1 %vm65_vm0, %v2738_v31 }
 0x500   :  { %v2003_v36 = vpop.f32.mrb[32].mxu1 }
 0x501   :  { %2207 = vrcp.f32 %v2003_v36  ;;  %v1130_v37 = vpop.f32.mrb[33].mxu1 }
 0x502   :  { %2209 = vrcp.f32 %v1130_v37 }
 0x504   :  { %v2006_v14 = vpop.f32.mrb[34].mxu1 }
 0x505   :  { %2211 = vrcp.f32 %v2006_v14  ;;  %v1140_v38 = vpop.f32.mrb[35].mxu1 }
 0x506   :  { %2213 = vrcp.f32 %v1140_v38 }
 0x508   :  { %v2009_v40 = vpop.f32.mrb[36].mxu1 }
 0x509   :  { %2215 = vrcp.f32 %v2009_v40  ;;  %v2742_v44 = vpop.f32.mrb[37].mxu1 }
 0x50a   :  { %2217 = vrcp.f32 %v2742_v44 }
 0x50b   :  { %v2208_v15 = vpop.eup %2207 }
 0x50c   :  { %v2210_v20 = vpop.eup %2209  ;;  %v1226_v47 = vmul.f32 %v2208_v15, %v2003_v36  ;;  %v2745_v21 = vpop.f32.mrb[38].mxu1 }
 0x50d   :  { %v1225_v26 = vmul.f32 %v2210_v20, %v1130_v37  ;;  %2219 = vrcp.f32 %v2745_v21  ;;  %v2748_v51 = vpop.f32.mrb[39].mxu1 }
 0x50e   :  { %v1242_v56 = vsub.f32 2.0, %v1226_v47  ;;  %2221 = vrcp.f32 %v2748_v51 }
 0x50f   :  { %v2212_v57 = vpop.eup %2211  ;;  %v1241_v59 = vsub.f32 2.0, %v1225_v26 }
 0x510   :  { %v2214_v32 = vpop.eup %2213  ;;  %v1258_v2 = vmul.f32 %v2208_v15, %v1242_v56  ;;  %v1228_v7 = vmul.f32 %v2212_v57, %v2006_v14  ;;  %v2751_v8 = vpop.f32.mrb[40].mxu1 }
 0x511   :  { %v1257_v34 = vmul.f32 %v2210_v20, %v1241_v59  ;;  %v1227_v42 = vmul.f32 %v2214_v32, %v1140_v38  ;;  %2223 = vrcp.f32 %v2751_v8  ;;  %v2754_v6 = vpop.f32.mrb[41].mxu1 }
 0x512   :  { %v1274_v12 = vmul.f32 %v2003_v36, %v1258_v2  ;;  %v1244_v16 = vsub.f32 2.0, %v1228_v7  ;;  %2225 = vrcp.f32 %v2754_v6 }
 0x513   :  { %v2216_v17 = vpop.eup %2215  ;;  %v1273_v45 = vmul.f32 %v1257_v34, %v1130_v37  ;;  %v1243_v53 = vsub.f32 2.0, %v1227_v42 }
 0x514   :  { %v2218_v19 = vpop.eup %2217  ;;  %v1290_v22 = vsub.f32 2.0, %v1274_v12  ;;  %v1260_v24 = vmul.f32 %v2212_v57, %v1244_v16  ;;  %v1230_v25 = vmul.f32 %v2216_v17, %v2009_v40  ;;  %v2757_v3 = vpop.f32.mrb[42].mxu1 }
 0x515   :  { %v1289_v15 = vsub.f32 2.0, %v1273_v45  ;;  %v1259_v20 = vmul.f32 %v2214_v32, %v1243_v53  ;;  %v1229_v47 = vmul.f32 %v2218_v19, %v2742_v44  ;;  %2227 = vrcp.f32 %v2757_v3  ;;  %v2761_v26 = vpop.f32.mrb[43].mxu1 }
 0x516   :  { %v1276_v36 = vmul.f32 %v2006_v14, %v1260_v24  ;;  %v1246_v56 = vsub.f32 2.0, %v1230_v25  ;;  %2229 = vrcp.f32 %v2761_v26  ;;  %v1306_v12 = vmul.f32 %v1290_v22, %v1258_v2 }
 0x517   :  { %v2220_v37 = vpop.eup %2219  ;;  %v1305_v59 = vmul.f32 %v1289_v15, %v1257_v34  ;;  %v1275_v7 = vmul.f32 %v1259_v20, %v1140_v38  ;;  %v1245_v57 = vsub.f32 2.0, %v1229_v47 }
 0x518   :  { %v2222_v42 = vpop.eup %2221  ;;  %v1292_v16 = vsub.f32 2.0, %v1276_v36  ;;  %v1262_v45 = vmul.f32 %v2216_v17, %v1246_v56  ;;  %v1232_v32 = vmul.f32 %v2220_v37, %v2745_v21  ;;  %v2765_v53 = vpop.f32.mrb[44].mxu1 }
 0x519   :  { %v1291_v0 = vsub.f32 2.0, %v1275_v7  ;;  %v1261_v1 = vmul.f32 %v2218_v19, %v1245_v57  ;;  %v1231_v14 = vmul.f32 %v2222_v42, %v2748_v51  ;;  %2231 = vrcp.f32 %v2765_v53  ;;  %v2769_v25 = vpop.f32.mrb[45].mxu1  ;;  %2027 = vmatprep.mubr.msk.f32.mxu0 %vm1322_vm4, %v1305_v59 }
 0x51a   :  { %v1278_v38 = vmul.f32 %v2009_v40, %v1262_v45  ;;  %v1248_v34 = vsub.f32 2.0, %v1232_v32  ;;  %2233 = vrcp.f32 %v2769_v25  ;;  %2028 = vmatmul.mubr.msk.f32.vlgmr.msra.gmra.mrb[32].mxu0 %vm1322_vm4, %v1306_v12  ;;  %v1308_v47 = vmul.f32 %v1292_v16, %v1260_v24 }
 0x51b   :  { %v2224_v2 = vpop.eup %2223  ;;  %v1307_v17 = vmul.f32 %v1291_v0, %v1259_v20  ;;  %v1277_v22 = vmul.f32 %v1261_v1, %v2742_v44  ;;  %v1247_v15 = vsub.f32 2.0, %v1231_v14 }
 0x51c   :  { %v2226_v19 = vpop.eup %2225  ;;  %v1294_v36 = vsub.f32 2.0, %v1278_v38  ;;  %v1264_v56 = vmul.f32 %v2220_v37, %v1248_v34  ;;  %v1234_v7 = vmul.f32 %v2224_v2, %v2751_v8  ;;  %v2776_v57 = vpop.f32.mrb[46].mxu1 }
 0x51d   :  { %v1293_v59 = vsub.f32 2.0, %v1277_v22  ;;  %v1263_v40 = vmul.f32 %v2222_v42, %v1247_v15  ;;  %v1233_v32 = vmul.f32 %v2226_v19, %v2754_v6  ;;  %2235 = vrcp.f32 %v2776_v57  ;;  %v2780_v12 = vpop.f32.mrb[47].mxu1  ;;  %2030 = vmatprep.mubr.msk.f32.mxu0 %vm1322_vm4, %v1307_v17 }
 0x51e   :  { %v1280_v0 = vmul.f32 %v2745_v21, %v1264_v56  ;;  %v1250_v44 = vsub.f32 2.0, %v1234_v7  ;;  %2237 = vrcp.f32 %v2780_v12  ;;  %2031 = vmatmul.mubr.msk.f32.gmra.mrb[34].mxu0 %vm1322_vm4, %v1308_v47  ;;  %v1310_v14 = vmul.f32 %v1294_v36, %v1262_v45 }
 0x51f   :  { %v2228_v24 = vpop.eup %2227  ;;  %v1309_v20 = vmul.f32 %v1293_v59, %v1261_v1  ;;  %v1279_v37 = vmul.f32 %v1263_v40, %v2748_v51  ;;  %v1249_v42 = vsub.f32 2.0, %v1233_v32 }
 0x520   :  { %v2230_v16 = vpop.eup %2229  ;;  %v1296_v38 = vsub.f32 2.0, %v1280_v0  ;;  %v1266_v34 = vmul.f32 %v2224_v2, %v1250_v44  ;;  %v1236_v22 = vmul.f32 %v2228_v24, %v2757_v3 }
 0x521   :  { %v1295_v15 = vsub.f32 2.0, %v1279_v37  ;;  %v1265_v17 = vmul.f32 %v2226_v19, %v1249_v42  ;;  %v1235_v21 = vmul.f32 %v2230_v16, %v2761_v26  ;;  %2033 = vmatprep.mubr.msk.f32.mxu0 %vm1322_vm4, %v1309_v20 }
 0x522   :  { %v1282_v7 = vmul.f32 %v2751_v8, %v1266_v34  ;;  %v1252_v47 = vsub.f32 2.0, %v1236_v22  ;;  %2034 = vmatmul.mubr.msk.f32.gmra.mrb[36].mxu0 %vm1322_vm4, %v1310_v14  ;;  %v1312_v2 = vmul.f32 %v1296_v38, %v1264_v56 }
 0x523   :  { %v2232_v1 = vpop.eup %2231  ;;  %v1311_v51 = vmul.f32 %v1295_v15, %v1263_v40  ;;  %v1281_v59 = vmul.f32 %v1265_v17, %v2754_v6  ;;  %v1251_v45 = vsub.f32 2.0, %v1235_v21 }
 0x524   :  { %v2234_v36 = vpop.eup %2233  ;;  %v1298_v32 = vsub.f32 2.0, %v1282_v7  ;;  %v1268_v0 = vmul.f32 %v2228_v24, %v1252_v47  ;;  %v1238_v19 = vmul.f32 %v2232_v1, %v2765_v53 }
 0x525   :  { %v1297_v44 = vsub.f32 2.0, %v1281_v59  ;;  %v1267_v37 = vmul.f32 %v2230_v16, %v1251_v45  ;;  %v1237_v20 = vmul.f32 %v2234_v36, %v2769_v25  ;;  %2036 = vmatprep.mubr.msk.f32.mxu0 %vm1322_vm4, %v1311_v51 }
 0x526   :  { %v1284_v8 = vmul.f32 %v2757_v3, %v1268_v0  ;;  %v1254_v42 = vsub.f32 2.0, %v1238_v19  ;;  %2037 = vmatmul.mubr.msk.f32.gmra.mrb[38].mxu0 %vm1322_vm4, %v1312_v2  ;;  %v1314_v24 = vmul.f32 %v1298_v32, %v1266_v34 }
 0x527   :  { %v2236_v40 = vpop.eup %2235  ;;  %v1313_v6 = vmul.f32 %v1297_v44, %v1265_v17  ;;  %v1283_v14 = vmul.f32 %v1267_v37, %v2761_v26  ;;  %v1253_v56 = vsub.f32 2.0, %v1237_v20 }
 0x528   :  { %v2238_v38 = vpop.eup %2237  ;;  %v1300_v22 = vsub.f32 2.0, %v1284_v8  ;;  %v1270_v15 = vmul.f32 %v2232_v1, %v1254_v42  ;;  %v1240_v16 = vmul.f32 %v2236_v40, %v2776_v57 }
 0x529   :  { %v1299_v21 = vsub.f32 2.0, %v1283_v14  ;;  %v1269_v7 = vmul.f32 %v2234_v36, %v1253_v56  ;;  %v1239_v47 = vmul.f32 %v2238_v38, %v2780_v12  ;;  %2039 = vmatprep.mubr.msk.f32.mxu0 %vm1322_vm4, %v1313_v6 }
 0x52a   :  { %v1286_v3 = vmul.f32 %v2765_v53, %v1270_v15  ;;  %v1256_v51 = vsub.f32 2.0, %v1240_v16  ;;  %2040 = vmatmul.mubr.msk.f32.gmra.mrb[40].mxu0 %vm1322_vm4, %v1314_v24  ;;  %v1316_v34 = vmul.f32 %v1300_v22, %v1268_v0 }
 0x52b   :  { %v1315_v17 = vmul.f32 %v1299_v21, %v1267_v37  ;;  %v1285_v26 = vmul.f32 %v1269_v7, %v2769_v25  ;;  %v1255_v59 = vsub.f32 2.0, %v1239_v47 }
 0x52c   :  { %v1302_v45 = vsub.f32 2.0, %v1286_v3  ;;  %v1272_v1 = vmul.f32 %v2236_v40, %v1256_v51 }
 0x52d   :  { %v1301_v2 = vsub.f32 2.0, %v1285_v26  ;;  %v1271_v32 = vmul.f32 %v2238_v38, %v1255_v59  ;;  %2042 = vmatprep.mubr.msk.f32.mxu0 %vm1322_vm4, %v1315_v17 }
 0x52e   :  { %v1288_v36 = vmul.f32 %v2776_v57, %v1272_v1  ;;  %2043 = vmatmul.mubr.msk.f32.gmra.mrb[42].mxu0 %vm1322_vm4, %v1316_v34  ;;  %v1318_v44 = vmul.f32 %v1302_v45, %v1270_v15 }
 0x52f   :  { %v1317_v19 = vmul.f32 %v1301_v2, %v1269_v7  ;;  %v1287_v53 = vmul.f32 %v1271_v32, %v2780_v12 }
 0x530   :  { %v1304_v20 = vsub.f32 2.0, %v1288_v36 }
 0x531   :  { %v1303_v37 = vsub.f32 2.0, %v1287_v53  ;;  %2045 = vmatprep.mubr.msk.f32.mxu0 %vm1322_vm4, %v1317_v19 }
 0x532   :  { %2046 = vmatmul.mubr.msk.f32.gmra.mrb[44].mxu0 %vm1322_vm4, %v1318_v44  ;;  %v1320_v0 = vmul.f32 %v1304_v20, %v1272_v1 }
 0x533   :  { %v1319_v25 = vmul.f32 %v1303_v37, %v1271_v32 }
 0x535   :  { %2048 = vmatprep.mubr.msk.f32.mxu0 %vm1322_vm4, %v1319_v25 }
 0x536   :  { %2049 = vmatmul.mubr.msk.f32.gmra.mrb[46].mxu0 %vm1322_vm4, %v1320_v0 }
 0x5ed   :  { %v2029_v8 = vpop.f32.mrb[32].mxu0 }
 0x5ee   :  { %v1521_v57 = vmul.f32 %v2677_v50, %v2029_v8  ;;  %v1441_v42 = vpop.f32.mrb[33].mxu0 }
 0x5ef   :  { %v1520_v40 = vmul.f32 %v2669_v10, %v1441_v42 }
 0x5f0   :  { %1554 = vrot.lane.b32.xlu1 %v1521_v57, %s2263_s10 }
 0x5f1   :  { %1552 = vrot.lane.b32.xlu0 %v1520_v40, %s2263_s10  ;;  %v2032_v12 = vpop.f32.mrb[34].mxu0 }
 0x5f2   :  { %v1523_v6 = vmul.f32 %v2685_v27, %v2032_v12  ;;  %v1451_v14 = vpop.f32.mrb[35].mxu0 }
 0x5f3   :  { %v1522_v38 = vmul.f32 %v2675_v48, %v1451_v14 }
 0x5f4   :  { %1558 = vrot.lane.b32.xlu1 %v1523_v6, %s2263_s10 }
 0x5f5   :  { %v2035_v56 = vpop.f32.mrb[36].mxu0 }
 0x5f6   :  { %v1461_v24 = vpop.f32.mrb[37].mxu0  ;;  %v1525_v22 = vmul.f32 %v2695_v11, %v2035_v56 }
 0x5f7   :  { %v1524_v50 = vmul.f32 %v2687_v5, %v1461_v24 }
 0x5f8   :  { %1556 = vrot.lane.b32.xlu1 %v1522_v38, %s2263_s10 }
 0x5f9   :  { %1560 = vrot.lane.b32.xlu0 %v1524_v50, %s2263_s10  ;;  %v2038_v10 = vpop.f32.mrb[38].mxu0 }
 0x5fa   :  { %v1471_v15 = vpop.f32.mrb[39].mxu0  ;;  %v1527_v48 = vmul.f32 %v2705_v18, %v2038_v10 }
 0x5fb   :  { %v1526_v16 = vmul.f32 %v2697_v13, %v1471_v15 }
 0x5fc   :  { %1562 = vrot.lane.b32.xlu1 %v1525_v22, %s2263_s10 }
 0x5fd   :  { %1564 = vrot.lane.b32.xlu0 %v1526_v16, %s2263_s10  ;;  %v2041_v27 = vpop.f32.mrb[40].mxu0 }
 0x5fe   :  { %v1481_v21 = vpop.f32.mrb[41].mxu0  ;;  %v1529_v11 = vmul.f32 %v2714_v54, %v2041_v27 }
 0x5ff   :  { %v1528_v5 = vmul.f32 %v2707_v23, %v1481_v21 }
 0x600   :  { %1566 = vrot.lane.b32.xlu1 %v1527_v48, %s2263_s10  ;;  %v2922_v48 = vld [vmem:[#allocation5_spill] sm:$0xff] }
 0x601   :  { %1568 = vrot.lane.b32.xlu0 %v1528_v5, %s2263_s10  ;;  %v2044_v7 = vpop.f32.mrb[42].mxu0 }
 0x602   :  { %v1491_v47 = vpop.f32.mrb[43].mxu0  ;;  %v1531_v18 = vmul.f32 %v2722_v4, %v2044_v7 }
 0x603   :  { %v1530_v13 = vmul.f32 %v2716_v28, %v1491_v47 }
 0x604   :  { %1570 = vrot.lane.b32.xlu1 %v1529_v11, %s2263_s10 }
 0x605   :  { %1572 = vrot.lane.b32.xlu0 %v1530_v13, %s2263_s10  ;;  %v2047_v3 = vpop.f32.mrb[44].mxu0 }
 0x606   :  { %v1501_v51 = vpop.f32.mrb[45].mxu0  ;;  %v1533_v54 = vmul.f32 %v2730_v30, %v2047_v3 }
 0x607   :  { %v1532_v23 = vmul.f32 %v2724_v29, %v1501_v51 }
 0x608   :  { %1574 = vrot.lane.b32.xlu1 %v1531_v18, %s2263_s10 }
 0x609   :  { %1576 = vrot.lane.b32.xlu0 %v1532_v23, %s2263_s10  ;;  %v2050_v17 = vpop.f32.mrb[46].mxu0 }
 0x60a   :  { %v1511_v26 = vpop.f32.mrb[47].mxu0  ;;  %v1535_v59 = vmul.f32 %v2738_v31, %v2050_v17 }
 0x60b   :  { %v1534_v28 = vmul.f32 %v2732_v9, %v1511_v26 }
 0x60c   :  { %1578 = vrot.lane.b32.xlu1 %v1533_v54, %s2263_s10 }
 0x60d   :  { %1580 = vrot.lane.b32.xlu0 %v1534_v28, %s2263_s10 }
 0x610   :  { %1582 = vrot.lane.b32.xlu1 %v1535_v59, %s2263_s10 }
 0x662   :  { %v1555_v4 = vpop.permute.xlu1 %1554 }
 0x663   :  { %v1601_v29 = vsel %vm505_vm2, %v2476_v35, %v1555_v4  ;;  %v1553_v34 = vpop.permute.xlu0 %1552 }
 0x664   :  { %v1618_v45 = vsel %vm1616_vm5, %v1601_v29, 0.0  ;;  %v1600_v30 = vsel %vm505_vm2, %v2473_v33, %v1553_v34 }
 0x665   :  { %1634 = vst [vmem:[#allocation2 + $0x8] sm:$0xff] %v1618_v45  ;;  %v1617_v9 = vsel %vm1616_vm5, %v1600_v30, 0.0 }
 0x666   :  { %1633 = vst [vmem:[#allocation2] sm:$0xff] %v1617_v9  ;;  %v1559_v1 = vpop.permute.xlu1 %1558 }
 0x667   :  { %v1603_v31 = vsel %vm505_vm2, %v2486_v41, %v1559_v1 }
 0x668   :  { %v1620_v2 = vsel %vm1616_vm5, %v1603_v31, 0.0 }
 0x669   :  { %1636 = vst [vmem:[#allocation2 + $0x18] sm:$0xff] %v1620_v2 }
 0x66a   :  { %v1557_v32 = vpop.permute.xlu1 %1556 }
 0x66b   :  { %v1602_v35 = vsel %vm505_vm2, %v2483_v39, %v1557_v32  ;;  %v1561_v36 = vpop.permute.xlu0 %1560 }
 0x66c   :  { %v1619_v19 = vsel %vm1616_vm5, %v1602_v35, 0.0  ;;  %v1604_v33 = vsel %vm505_vm2, %v2495_v46, %v1561_v36 }
 0x66d   :  { %1635 = vst [vmem:[#allocation2 + $0x10] sm:$0xff] %v1619_v19  ;;  %v1621_v53 = vsel %vm1616_vm5, %v1604_v33, 0.0 }
 0x66e   :  { %1637 = vst [vmem:[#allocation2 + $0x20] sm:$0xff] %v1621_v53  ;;  %v1563_v44 = vpop.permute.xlu1 %1562 }
 0x66f   :  { %v1605_v41 = vsel %vm505_vm2, %v2492_v43, %v1563_v44  ;;  %v1565_v20 = vpop.permute.xlu0 %1564 }
 0x670   :  { %v1622_v37 = vsel %vm1616_vm5, %v1605_v41, 0.0  ;;  %v1606_v39 = vsel %vm505_vm2, %v2505_v52, %v1565_v20 }
 0x671   :  { %1638 = vst [vmem:[#allocation2 + $0x28] sm:$0xff] %v1622_v37  ;;  %v1623_v25 = vsel %vm1616_vm5, %v1606_v39, 0.0 }
 0x672   :  { %1639 = vst [vmem:[#allocation2 + $0x30] sm:$0xff] %v1623_v25  ;;  %v1567_v0 = vpop.permute.xlu1 %1566 }
 0x673   :  { %v1607_v46 = vsel %vm505_vm2, %v2502_v49, %v1567_v0  ;;  %v1569_v8 = vpop.permute.xlu0 %1568 }
 0x674   :  { %v1624_v57 = vsel %vm1616_vm5, %v1607_v46, 0.0  ;;  %v1608_v43 = vsel %vm505_vm2, %v2515_v58, %v1569_v8 }
 0x675   :  { %1640 = vst [vmem:[#allocation2 + $0x38] sm:$0xff] %v1624_v57  ;;  %v1625_v42 = vsel %vm1616_vm5, %v1608_v43, 0.0 }
 0x676   :  { %1641 = vst [vmem:[#allocation2 + $0x40] sm:$0xff] %v1625_v42  ;;  %v1571_v40 = vpop.permute.xlu1 %1570 }
 0x677   :  { %v1609_v52 = vsel %vm505_vm2, %v2512_v55, %v1571_v40  ;;  %v1573_v12 = vpop.permute.xlu0 %1572 }
 0x678   :  { %v1626_v6 = vsel %vm1616_vm5, %v1609_v52, 0.0  ;;  %v1610_v49 = vsel %vm505_vm2, %v2524_v61, %v1573_v12 }
 0x679   :  { %1642 = vst [vmem:[#allocation2 + $0x48] sm:$0xff] %v1626_v6  ;;  %v1627_v14 = vsel %vm1616_vm5, %v1610_v49, 0.0 }
 0x67a   :  { %1643 = vst [vmem:[#allocation2 + $0x50] sm:$0xff] %v1627_v14  ;;  %v1575_v56 = vpop.permute.xlu1 %1574 }
 0x67b   :  { %v1611_v58 = vsel %vm505_vm2, %v2522_v60, %v1575_v56  ;;  %v1577_v38 = vpop.permute.xlu0 %1576  ;;  %v2921_v60 = vld [vmem:[#allocation6_spill] sm:$0xff] }
 0x67c   :  { %v1628_v24 = vsel %vm1616_vm5, %v1611_v58, 0.0  ;;  %v1612_v55 = vsel %vm505_vm2, %v2532_v63, %v1577_v38 }
 0x67d   :  { %1644 = vst [vmem:[#allocation2 + $0x58] sm:$0xff] %v1628_v24  ;;  %v1629_v50 = vsel %vm1616_vm5, %v1612_v55, 0.0 }
 0x67e   :  { %1645 = vst [vmem:[#allocation2 + $0x60] sm:$0xff] %v1629_v50  ;;  %v1579_v10 = vpop.permute.xlu1 %1578 }
 0x67f   :  { %v1613_v61 = vsel %vm505_vm2, %v2530_v62, %v1579_v10  ;;  %v1581_v22 = vpop.permute.xlu0 %1580 }
 0x680   :  { %v1630_v15 = vsel %vm1616_vm5, %v1613_v61, 0.0  ;;  %v1614_v16 = vsel %vm505_vm2, %v2921_v60, %v1581_v22 }
 0x681   :  { %1646 = vst [vmem:[#allocation2 + $0x68] sm:$0xff] %v1630_v15  ;;  %v1631_v27 = vsel %vm1616_vm5, %v1614_v16, 0.0 }
 0x682   :  { %1647 = vst [vmem:[#allocation2 + $0x70] sm:$0xff] %v1631_v27  ;;  %v1583_v63 = vpop.permute.xlu1 %1582 }
 0x683   :  { %v1615_v21 = vsel %vm505_vm2, %v2922_v48, %v1583_v63 }
 0x684   :  { %v1632_v5 = vsel %vm1616_vm5, %v1615_v21, 0.0 }
 0x685   :  { %1648 = vst [vmem:[#allocation2 + $0x78] sm:$0xff] %v1632_v5 }
 0x686   :  { %2250 = shalt.err (!%p2247_p4)
}
 0x687   :  { %s2251_s0 = scalar_lea.hbm %s2916_s11, 2048 }
 0x688   :  { %p2252_p5 = scmp.ne.s32.totalorder %s2916_s11, %s2251_s0  ;;  %p2255_p6 = scmp.lt.u32.totalorder %s2251_s0, %s2916_s11 }
 0x68a   :  { %p2257_p7 = pnand %p2255_p6, %p2252_p5 }
 0x68c   :  { %2260 = shalt.err (!%p2257_p7)
}
 0x68d   :  { %s2265_s25 = smov 128   ;;  %s2266_s5 = smov 8  }
 0x68e   :  { %1660 = dma.vmem_to_hbm [thread:$0]  %s1655_s19, 2048, %s2916_s11, [#allocation3], %s2265_s25, %s2265_s25, %s2266_s5  }
 0x68f   :  { %2261 = dma.done.wait [#allocation3], 2048  }
 0x690   :  { %2262 = vsyncadd [#allocation3], 4294965248 }
 0x691   :  { %1664 = vsyncpa [#allocation3], 1 }

</bundles_post_ra>
